<compile_context>
chip_gen: v5e
topology: v5e:2x2
jax: 0.10.0
libtpu: 0.0.40
codegen_flags: <defaults>
</compile_context>

<pallas_src>
import jax
import jax.numpy as jnp
from jax.experimental import pallas as pl
from jax.experimental.pallas import tpu as pltpu

LATENT_DIM = 2
DATA_DIM = 10
HIDDEN = 64

# ---- packed layouts (all static) ----
LANES = 128                          # lane-dense slab width
K_PAD = 16                           # encoder fc1 contraction padded 10 -> 16

# activation slab lanes
_X_OFF = 0                           # x in lanes 0..9 (10..15 zero)
_EPS_OFF = K_PAD                     # eps in lanes 16..17

# parameter slab rows
_W1E_ROW = 0                         # rows 0..15  : enc_w1 padded (16, 64)
_W64_ROW = 16                        # rows 16..79 : [wm | wlv | wod]
_BIAS1_ROW = 80                      # row 80      : [enc_b1 | dec_b1]
_BIAS2_ROW = 81                      # row 81      : [bm | blv | bod]
_W1D_ROW = 82                        # row 82      : [dec_w1 r0 | dec_w1 r1]
P_ROWS = 88                          # padded to a multiple of 8

_WMV_COLS = 2 * LATENT_DIM           # 4 (fused mean|logvar weight columns)

# output slab lanes
_RECON_OFF = 0
_MEAN_OFF = DATA_DIM                 # 10
_LOGVAR_OFF = DATA_DIM + LATENT_DIM  # 12
_OUT_USED = DATA_DIM + 2 * LATENT_DIM  # 14


def betavae_kernel(act_ref, p_ref, out_ref):
    # ---- unpack activation slab ----
    xp = act_ref[:, 0:K_PAD]                                 # (B, 16) padded x
    eps = act_ref[:, _EPS_OFF:_EPS_OFF + LATENT_DIM]         # (B, 2)

    # ---- static views into the parameter slab (free, no data movement) ----
    w1e = p_ref[_W1E_ROW:_W1E_ROW + K_PAD, 0:HIDDEN]                     # (16, 64)
    wmv = p_ref[_W64_ROW:_W64_ROW + HIDDEN, 0:_WMV_COLS]                 # (64, 4)
    wod = p_ref[_W64_ROW:_W64_ROW + HIDDEN,
                _WMV_COLS:_WMV_COLS + DATA_DIM]                          # (64, 10)
    b1e = p_ref[_BIAS1_ROW:_BIAS1_ROW + 1, 0:HIDDEN]                     # (1, 64)
    b1d = p_ref[_BIAS1_ROW:_BIAS1_ROW + 1, HIDDEN:2 * HIDDEN]            # (1, 64)
    bmv = p_ref[_BIAS2_ROW:_BIAS2_ROW + 1, 0:_WMV_COLS]                  # (1, 4)
    bod = p_ref[_BIAS2_ROW:_BIAS2_ROW + 1,
                _WMV_COLS:_WMV_COLS + DATA_DIM]                          # (1, 10)
    w1d_r0 = p_ref[_W1D_ROW:_W1D_ROW + 1, 0:HIDDEN]                      # (1, 64)
    w1d_r1 = p_ref[_W1D_ROW:_W1D_ROW + 1, HIDDEN:2 * HIDDEN]             # (1, 64)

    # ---- Encoder ----
    # K=16 padded contraction: lanes 10..15 of xp and rows 10..15 of w1e are 0.
    h = jnp.dot(xp, w1e, preferred_element_type=jnp.float32) + b1e
    h = jnp.maximum(h, 0.0)                                   # relu, (B, 64)

    # Fused mean/logvar projection: one (B,64)@(64,4) matmul instead of two.
    # NOTE: on v5e/v6e this could move to VPU+XLU to skip an MXU FIFO
    # round-trip; kept on the MXU for portability (tens-of-cycles either way).
    mv = jnp.dot(h, wmv, preferred_element_type=jnp.float32) + bmv
    z_mean = mv[:, 0:LATENT_DIM]                              # (B, 2)
    z_logvar = mv[:, LATENT_DIM:2 * LATENT_DIM]               # (B, 2)

    # ---- Reparameterization ----
    z = z_mean + jnp.exp(0.5 * z_logvar) * eps                # (B, 2)

    # ---- Decoder ----
    # K=2 matmul done as two VPU broadcast-FMAs (no MXU round trip).
    hd = z[:, 0:1] * w1d_r0 + z[:, 1:2] * w1d_r1 + b1d        # (B, 64)
    hd = jnp.maximum(hd, 0.0)                                 # relu

    logits = jnp.dot(hd, wod, preferred_element_type=jnp.float32) + bod
    recon = jax.nn.sigmoid(logits)                            # (B, 10)

    # ---- single lane-dense packed output (B, 128), one unmasked store ----
    B = out_ref.shape[0]
    pad = jnp.zeros((B, LANES - _OUT_USED), jnp.float32)
    out_ref[...] = jnp.concatenate([recon, z_mean, z_logvar, pad], axis=1)


def pack_params(params):
    """Pack the 10 small parameters into ONE (88, 128) f32 slab (one-time prep)."""
    slab = jnp.zeros((P_ROWS, LANES), jnp.float32)
    slab = slab.at[0:DATA_DIM, 0:HIDDEN].set(params["enc_w1"])              # rows 0..9
    slab = slab.at[_W64_ROW:_W64_ROW + HIDDEN, 0:LATENT_DIM].set(params["enc_wm"])
    slab = slab.at[_W64_ROW:_W64_ROW + HIDDEN,
                   LATENT_DIM:_WMV_COLS].set(params["enc_wlv"])
    slab = slab.at[_W64_ROW:_W64_ROW + HIDDEN,
                   _WMV_COLS:_WMV_COLS + DATA_DIM].set(params["dec_wo"])
    slab = slab.at[_BIAS1_ROW, 0:HIDDEN].set(params["enc_b1"][0])
    slab = slab.at[_BIAS1_ROW, HIDDEN:2 * HIDDEN].set(params["dec_b1"][0])
    slab = slab.at[_BIAS2_ROW, 0:LATENT_DIM].set(params["enc_bm"][0])
    slab = slab.at[_BIAS2_ROW, LATENT_DIM:_WMV_COLS].set(params["enc_blv"][0])
    slab = slab.at[_BIAS2_ROW, _WMV_COLS:_WMV_COLS + DATA_DIM].set(params["dec_bo"][0])
    slab = slab.at[_W1D_ROW, 0:2 * HIDDEN].set(params["dec_w1"].reshape(-1))
    return slab


def pack_inputs(x, epsilon):
    """Pack x and eps into ONE lane-dense (B, 128) activation slab."""
    B = x.shape[0]
    slab = jnp.zeros((B, LANES), jnp.float32)
    slab = slab.at[:, _X_OFF:_X_OFF + DATA_DIM].set(x)        # lanes 10..15 stay 0
    slab = slab.at[:, _EPS_OFF:_EPS_OFF + LATENT_DIM].set(epsilon)
    return slab


def beta_vae_forward(x, param_slab, epsilon):
    """BetaVAE forward. Returns (reconstructed, z_mean, z_logvar, epsilon)."""
    B = x.shape[0]
    act_slab = pack_inputs(x, epsilon)
    vmem = pl.BlockSpec(memory_space=pltpu.MemorySpace.VMEM)

    flops = 2 * B * (K_PAD * HIDDEN               # encoder fc1 (padded K)
                     + HIDDEN * _WMV_COLS         # fused mean|logvar
                     + LATENT_DIM * HIDDEN        # decoder fc1 (VPU FMAs)
                     + HIDDEN * DATA_DIM)         # decoder output
    bytes_accessed = 4 * (B * LANES               # activation slab in
                          + P_ROWS * LANES        # parameter slab in
                          + B * LANES)            # packed output
    cost = pl.CostEstimate(
        flops=flops,
        transcendentals=B * (LATENT_DIM + DATA_DIM),  # exp + sigmoid
        bytes_accessed=bytes_accessed,
    )

    # TODO(synk): for large B (esp. v7x, 64 MiB VMEM / 2 TCs) switch to a
    # batch-blocked grid with dimension_semantics=("parallel",).
    packed_out = pl.pallas_call(
        betavae_kernel,
        out_shape=jax.ShapeDtypeStruct((B, LANES), jnp.float32),
        in_specs=[vmem, vmem],
        out_specs=vmem,
        cost_estimate=cost,
    )(act_slab, param_slab)

    recon = packed_out[:, _RECON_OFF:_RECON_OFF + DATA_DIM]
    z_mean = packed_out[:, _MEAN_OFF:_MEAN_OFF + LATENT_DIM]
    z_logvar = packed_out[:, _LOGVAR_OFF:_LOGVAR_OFF + LATENT_DIM]
    return recon, z_mean, z_logvar, epsilon


def init_params(key):
    """Deterministic synthetic parameter init (PyTorch-style uniform ranges)."""
    def linear(key, fan_in, fan_out):
        kw, kb = jax.random.split(key)
        bound = 1.0 / jnp.sqrt(fan_in)
        w = jax.random.uniform(kw, (fan_in, fan_out), jnp.float32, -bound, bound)
        b = jax.random.uniform(kb, (1, fan_out), jnp.float32, -bound, bound)
        return w, b

    keys = jax.random.split(key, 5)
    enc_w1, enc_b1 = linear(keys[0], DATA_DIM, HIDDEN)
    enc_wm, enc_bm = linear(keys[1], HIDDEN, LATENT_DIM)
    enc_wlv, enc_blv = linear(keys[2], HIDDEN, LATENT_DIM)
    dec_w1, dec_b1 = linear(keys[3], LATENT_DIM, HIDDEN)
    dec_wo, dec_bo = linear(keys[4], HIDDEN, DATA_DIM)
    return {
        "enc_w1": enc_w1, "enc_b1": enc_b1,
        "enc_wm": enc_wm, "enc_bm": enc_bm,
        "enc_wlv": enc_wlv, "enc_blv": enc_blv,
        "dec_w1": dec_w1, "dec_b1": dec_b1,
        "dec_wo": dec_wo, "dec_bo": dec_bo,
    }


def reference_forward(x, params, epsilon):
    """Pure-JAX reference for validation (unpacked params)."""
    h = jnp.maximum(x @ params["enc_w1"] + params["enc_b1"], 0.0)
    z_mean = h @ params["enc_wm"] + params["enc_bm"]
    z_logvar = h @ params["enc_wlv"] + params["enc_blv"]
    z = z_mean + jnp.exp(0.5 * z_logvar) * epsilon
    hd = jnp.maximum(z @ params["dec_w1"] + params["dec_b1"], 0.0)
    recon = jax.nn.sigmoid(hd @ params["dec_wo"] + params["dec_bo"])
    return recon, z_mean, z_logvar, epsilon


if __name__ == "__main__":
    key = jax.random.PRNGKey(0)
    k_param, k_x, k_eps = jax.random.split(key, 3)

    batch = 8
    params = init_params(k_param)
    param_slab = pack_params(params)

    x = jax.random.normal(k_x, (batch, DATA_DIM), jnp.float32)
    # epsilon = torch.randn_like(z_mean): generated outside the kernel and
    # passed in so the forward pass is deterministic and epsilon is returned.
    epsilon = jax.random.normal(k_eps, (batch, LATENT_DIM), jnp.float32)

    recon, z_mean, z_logvar, eps_out = beta_vae_forward(x, param_slab, epsilon)
    jax.block_until_ready((recon, z_mean, z_logvar, eps_out))

    # sanity-check against pure-JAX reference
    r_ref, m_ref, lv_ref, _ = reference_forward(x, params, epsilon)
    assert jnp.allclose(recon, r_ref, atol=1e-5), "recon mismatch"
    assert jnp.allclose(z_mean, m_ref, atol=1e-5), "z_mean mismatch"
    assert jnp.allclose(z_logvar, lv_ref, atol=1e-5), "z_logvar mismatch"

    print("KERNEL_OK")
</pallas_src>

<mosaic_0001>
module attributes {stable_mosaic.version = 11 : i64} {
  func.func @betavae_kernel(%arg0: memref<8x128xf32, #tpu.memory_space<vmem>>, %arg1: memref<88x128xf32, #tpu.memory_space<vmem>>, %arg2: memref<8x128xf32, #tpu.memory_space<vmem>>) attributes {dimension_semantics = [], scalar_prefetch = 0 : i64, scratch_operands = 0 : i64, tpu.core_type = #tpu.core_type<tc>} {
    %c0 = arith.constant 0 : index
    %c0_0 = arith.constant 0 : index
    %0 = vector.load %arg0[%c0, %c0_0] : memref<8x128xf32, #tpu.memory_space<vmem>>, vector<8x16xf32>
    %c0_1 = arith.constant 0 : index
    %c16 = arith.constant 16 : index
    %1 = vector.load %arg0[%c0_1, %c16] : memref<8x128xf32, #tpu.memory_space<vmem>>, vector<8x2xf32>
    %c0_2 = arith.constant 0 : index
    %c0_3 = arith.constant 0 : index
    %2 = vector.load %arg1[%c0_2, %c0_3] : memref<88x128xf32, #tpu.memory_space<vmem>>, vector<16x64xf32>
    %c16_4 = arith.constant 16 : index
    %c0_5 = arith.constant 0 : index
    %3 = vector.load %arg1[%c16_4, %c0_5] : memref<88x128xf32, #tpu.memory_space<vmem>>, vector<64x4xf32>
    %c16_6 = arith.constant 16 : index
    %c4 = arith.constant 4 : index
    %4 = vector.load %arg1[%c16_6, %c4] : memref<88x128xf32, #tpu.memory_space<vmem>>, vector<64x10xf32>
    %c80 = arith.constant 80 : index
    %c0_7 = arith.constant 0 : index
    %5 = vector.load %arg1[%c80, %c0_7] : memref<88x128xf32, #tpu.memory_space<vmem>>, vector<1x64xf32>
    %c80_8 = arith.constant 80 : index
    %c64 = arith.constant 64 : index
    %6 = vector.load %arg1[%c80_8, %c64] : memref<88x128xf32, #tpu.memory_space<vmem>>, vector<1x64xf32>
    %c81 = arith.constant 81 : index
    %c0_9 = arith.constant 0 : index
    %7 = vector.load %arg1[%c81, %c0_9] : memref<88x128xf32, #tpu.memory_space<vmem>>, vector<1x4xf32>
    %c81_10 = arith.constant 81 : index
    %c4_11 = arith.constant 4 : index
    %8 = vector.load %arg1[%c81_10, %c4_11] : memref<88x128xf32, #tpu.memory_space<vmem>>, vector<1x10xf32>
    %c82 = arith.constant 82 : index
    %c0_12 = arith.constant 0 : index
    %9 = vector.load %arg1[%c82, %c0_12] : memref<88x128xf32, #tpu.memory_space<vmem>>, vector<1x64xf32>
    %c82_13 = arith.constant 82 : index
    %c64_14 = arith.constant 64 : index
    %10 = vector.load %arg1[%c82_13, %c64_14] : memref<88x128xf32, #tpu.memory_space<vmem>>, vector<1x64xf32>
    %cst = arith.constant dense<0.000000e+00> : vector<8x64xf32>
    %11 = tpu.matmul %0, %2, %cst {dimension_numbers = #tpu.dot_dimension_numbers<[1], [0], [0], [1], [0, 0, 1, 1], [], []>} : vector<8x16xf32>, vector<16x64xf32>, vector<8x64xf32> -> vector<8x64xf32>
    %12 = vector.broadcast %5 : vector<1x64xf32> to vector<8x64xf32>
    %13 = arith.addf %11, %12 : vector<8x64xf32>
    %cst_15 = arith.constant 0.000000e+00 : f32
    %14 = vector.broadcast %cst_15 : f32 to vector<8x64xf32>
    %15 = arith.maximumf %13, %14 : vector<8x64xf32>
    %cst_16 = arith.constant dense<0.000000e+00> : vector<8x4xf32>
    %16 = tpu.matmul %15, %3, %cst_16 {dimension_numbers = #tpu.dot_dimension_numbers<[1], [0], [0], [1], [0, 0, 1, 1], [], []>} : vector<8x64xf32>, vector<64x4xf32>, vector<8x4xf32> -> vector<8x4xf32>
    %17 = vector.broadcast %7 : vector<1x4xf32> to vector<8x4xf32>
    %18 = arith.addf %16, %17 : vector<8x4xf32>
    %19 = vector.extract_strided_slice %18 {offsets = [0, 0], sizes = [8, 2], strides = [1, 1]} : vector<8x4xf32> to vector<8x2xf32>
    %20 = vector.extract_strided_slice %18 {offsets = [0, 2], sizes = [8, 2], strides = [1, 1]} : vector<8x4xf32> to vector<8x2xf32>
    %cst_17 = arith.constant 5.000000e-01 : f32
    %21 = vector.broadcast %cst_17 : f32 to vector<8x2xf32>
    %22 = arith.mulf %21, %20 : vector<8x2xf32>
    %23 = math.exp %22 : vector<8x2xf32>
    %24 = arith.mulf %23, %1 : vector<8x2xf32>
    %25 = arith.addf %19, %24 : vector<8x2xf32>
    %26 = vector.extract_strided_slice %25 {offsets = [0, 0], sizes = [8, 1], strides = [1, 1]} : vector<8x2xf32> to vector<8x1xf32>
    %27 = vector.broadcast %26 : vector<8x1xf32> to vector<8x64xf32>
    %28 = vector.broadcast %9 : vector<1x64xf32> to vector<8x64xf32>
    %29 = arith.mulf %27, %28 : vector<8x64xf32>
    %30 = vector.extract_strided_slice %25 {offsets = [0, 1], sizes = [8, 1], strides = [1, 1]} : vector<8x2xf32> to vector<8x1xf32>
    %31 = vector.broadcast %30 : vector<8x1xf32> to vector<8x64xf32>
    %32 = vector.broadcast %10 : vector<1x64xf32> to vector<8x64xf32>
    %33 = arith.mulf %31, %32 : vector<8x64xf32>
    %34 = arith.addf %29, %33 : vector<8x64xf32>
    %35 = vector.broadcast %6 : vector<1x64xf32> to vector<8x64xf32>
    %36 = arith.addf %34, %35 : vector<8x64xf32>
    %cst_18 = arith.constant 0.000000e+00 : f32
    %37 = vector.broadcast %cst_18 : f32 to vector<8x64xf32>
    %38 = arith.maximumf %36, %37 : vector<8x64xf32>
    %cst_19 = arith.constant dense<0.000000e+00> : vector<8x10xf32>
    %39 = tpu.matmul %38, %4, %cst_19 {dimension_numbers = #tpu.dot_dimension_numbers<[1], [0], [0], [1], [0, 0, 1, 1], [], []>} : vector<8x64xf32>, vector<64x10xf32>, vector<8x10xf32> -> vector<8x10xf32>
    %40 = vector.broadcast %8 : vector<1x10xf32> to vector<8x10xf32>
    %41 = arith.addf %39, %40 : vector<8x10xf32>
    %42 = arith.negf %41 : vector<8x10xf32>
    %43 = math.exp %42 : vector<8x10xf32>
    %cst_20 = arith.constant 1.000000e+00 : f32
    %44 = vector.broadcast %cst_20 : f32 to vector<8x10xf32>
    %45 = arith.addf %44, %43 : vector<8x10xf32>
    %46 = arith.divf %44, %45 : vector<8x10xf32>
    %cst_21 = arith.constant 0.000000e+00 : f32
    %47 = vector.broadcast %cst_21 : f32 to vector<8x114xf32>
    %48 = tpu.concatenate %46, %19, %20, %47 in 1 : vector<8x10xf32>, vector<8x2xf32>, vector<8x2xf32>, vector<8x114xf32> -> vector<8x128xf32>
    %c0_22 = arith.constant 0 : index
    %c0_23 = arith.constant 0 : index
    %49 = vector.load %arg2[%c0_22, %c0_23] : memref<8x128xf32, #tpu.memory_space<vmem>>, vector<8x128xf32>
    tpu.vector_store %arg2[%c0_22, %c0_23], %48 {strides = array<i32>} : memref<8x128xf32, #tpu.memory_space<vmem>>, vector<8x128xf32>,
    return
  }
}

</mosaic_0001>

<bundles_post_ra>
// kernel: tpu_custom_call.1
= control target key start
LH: loop header
LB: loop body
LE: loop exit
PB: predicated region body
PF: predicated region fallthrough
CT: control target
= control target key end

     0   :  { %7 = vsyncpa [#allocation3], 0  ;;  %s418_s0 = inlined_call_operand.hbm [shape: f32[8,128], index: 0, kind: input, shape index: {}]   ;;  %s419_s1 = inlined_call_operand.hbm [shape: f32[88,128], index: 1, kind: input, shape index: {}]   ;;  %s420_s2 = inlined_call_operand.hbm [shape: f32[8,128], index: 2, kind: output, shape index: {}]  }
   0x1   :  { %8 = vsyncpa [#allocation6], 0 }
   0x2   :  { %9 = vsyncpa [#allocation4], 0  ;;  %s15_s11 = sshll.u32 %s418_s0, 4  ;;  %s375_s12 = smov [#allocation2]   ;;  %s16_s11 = int_to_ptr.hbm [resolvable:$true] %s15_s11 }
   0x3   :  { %s17_s13 = sshll.u32 %s375_s12, 4  ;;  %s25_s16 = sshll.u32 %s419_s1, 4  ;;  %s18_s13 = int_to_ptr.vmem [resolvable:$true] %s17_s13  ;;  %s26_s16 = int_to_ptr.hbm [resolvable:$true] %s25_s16 }
   0x4   :  { %20 = dma.hbm_to_vmem [thread:$0]  %s16_s11, 128, %s18_s13, [#allocation3]  }
   0x5   :  { %s376_s17 = smov [#allocation5]   ;;  %s377_s19 = smov 128  }
   0x6   :  { %s27_s18 = sshll.u32 %s376_s17, 4  ;;  %s378_s20 = smov 8   ;;  %s28_s18 = int_to_ptr.vmem [resolvable:$true] %s27_s18 }
   0x7   :  { %33 = dma.hbm_to_vmem [thread:$0]  %s26_s16, 1408, %s28_s18, [#allocation6], %s377_s19, %s377_s19, %s378_s20  }
   0x8   :  { %369 = dma.done.wait [#allocation3], 128  }
   0x9   :  { %370 = vsyncadd [#allocation3], 4294967168 }
   0xa   :  { %371 = dma.done.wait [#allocation6], 1408  }
   0xb   :  { %372 = vsyncadd [#allocation6], 4294965888  ;;  %v44_v0 = vld [vmem:[#allocation5 + $0x8] sm:$0xff]  ;;  %v43_v1 = vld [vmem:[#allocation5] sm:$0xff]  ;;  %vm57_vm0 = vcmask 130048   ;;  %s379_s0 = smov 114  }
   0xc   :  { %75 = vmatpush.msra.mxu0 %v44_v0  ;;  %v42_v2 = vld [vmem:[#allocation2] sm:$0xff]  ;;  %v52_v3 = vld [vmem:[#allocation5 + $0x48] sm:$0xff]  ;;  %v51_v4 = vld [vmem:[#allocation5 + $0x40] sm:$0xff]  ;;  %vm83_vm1 = vcmask 523264   ;;  %s380_s1 = smov 124   ;;  %s381_s21 = smov 126  }
   0xd   :  { %95 = vmatpush.msra.mxu1 %v52_v3  ;;  %v266_v5 = vpack.i.bf16 %v51_v4, %v52_v3  ;;  %v50_v6 = vld [vmem:[#allocation5 + $0x38] sm:$0xff]  ;;  %v49_v7 = vld [vmem:[#allocation5 + $0x30] sm:$0xff]  ;;  %v48_v8 = vld [vmem:[#allocation5 + $0x28] sm:$0xff]  ;;  %110 = vrot.lane.b32.xlu0 %v42_v2, %s379_s0  ;;  %v382_v27 = vmov 1   ;;  %v383_v28 = vmov 0   ;;  %s384_s22 = smov 64  }
   0xe   :  { %76 = vmatpush.msra.mxu0 %v43_v1  ;;  %v47_v9 = vld [vmem:[#allocation5 + $0x20] sm:$0xff]  ;;  %v46_v10 = vld [vmem:[#allocation5 + $0x18] sm:$0xff]  ;;  %v45_v11 = vld [vmem:[#allocation5 + $0x10] sm:$0xff]  ;;  %v271_v17 = vpack.i.bf16 %v49_v7, %v50_v6  ;;  %265 = vset.pattern.permute.xlu1 %v382_v27  ;;  %s385_s23 = smov 10   ;;  %vm224_vm5 = vcmask 80896   ;;  %vm226_vm7 = vcmask 97280  }
   0xf   :  { %249 = vmatmul.msk.f32.vlgmr.msra.gmra.mxu0 %vm57_vm0, %v42_v2  ;;  %96 = vmatpush.msra.mxu1 %v51_v4  ;;  %v282_v12 = vpack.i.bf16 %v45_v11, %v46_v10  ;;  %v288_v13 = vld [vmem:[#allocation5 + $0x50] ss:$0 sm:$0xff]  ;;  %v289_v18 = vld [vmem:[#allocation5 + $0x51] ss:$0 sm:$0xff]  ;;  %v276_v26 = vpack.i.bf16 %v47_v9, %v48_v8  ;;  %v290_v31 = vld [vmem:[#allocation5 + $0x52] ss:$0 sm:$0xff] }
  0x10   :  { %272 = vrot.lane.b32.xlu2 %v271_v17, %s380_s1  ;;  %287 = vset.pattern.permute.xlu0 %v382_v27  ;;  %s386_s24 = smov [#allocation7]   ;;  %s238_s28 = sshll.u32 %s420_s2, 4  ;;  %vm228_vm8 = vcmask 113664   ;;  %s239_s28 = int_to_ptr.hbm [resolvable:$true] %s238_s28 }
  0x11   :  { %97 = vmatpush.msra.mxu1 %v50_v6  ;;  %281 = vset.pattern.permute.xlu2 %v383_v28  ;;  %s236_s25 = sshll.u32 %s386_s24, 4  ;;  %s237_s25 = int_to_ptr.vmem [resolvable:$true] %s236_s25 }
  0x13   :  { %98 = vmatpush.msra.mxu1 %v49_v7 }
  0x15   :  { %99 = vmatpush.msra.mxu1 %v48_v8 }
  0x17   :  { %100 = vmatpush.msra.mxu1 %v47_v9 }
  0x19   :  { %101 = vmatpush.msra.mxu1 %v46_v10 }
  0x1b   :  { %102 = vmatpush.msra.mxu1 %v45_v11 }
  0x6a   :  { %v273_v38 = vpop.permute.xlu2 %272 }
  0x6b   :  { %v274_v39 = vunpack.i.l.bf16 %v273_v38  ;;  %v275_v40 = vunpack.i.h.bf16 %v273_v38 }
  0x7f   :  { %v111_v23 = vpop.permute.xlu0 %110 }
  0x8c   :  { %v78_v14 = vpop.f32.mrf.mxu0 }
  0x8d   :  { %v79_v15 = vadd.f32 %v288_v13, %v78_v14 }
  0x8f   :  { %v81_v16 = vmax.f32 %v79_v15, 0.0 }
  0x91   :  { %250 = vmatmul.msk.f32.vlgmr.msra.gmra.mxu1 %vm83_vm1, %v81_v16 }
 0x10e   :  { %v104_v19 = vpop.f32.mrf.mxu1 }
 0x10f   :  { %v105_v20 = vadd.f32 %v289_v18, %v104_v19 }
 0x111   :  { %v107_v21 = vmul.f32 0.5, %v105_v20 }
 0x113   :  { %v108_v22 = vmul.f32 1.442695, %v107_v21 }
 0x115   :  { %291 = vpow2.f32 %v108_v22 }
 0x11b   :  { %v292_v24 = vpop.eup %291 }
 0x11c   :  { %v113_v25 = vmul.f32 %v292_v24, %v111_v23 }
 0x11e   :  { %115 = vrot.lane.b32.xlu0 %v113_v25, %s381_s21 }
 0x126   :  { %277 = vrot.lane.b32.xlu0 %v276_v26, %s380_s1 }
 0x12e   :  { %283 = vrot.lane.b32.xlu0 %v282_v12, %s380_s1 }
 0x190   :  { %v116_v29 = vpop.permute.xlu0 %115 }
 0x191   :  { %v118_v30 = vadd.f32 %v116_v29, %v105_v20 }
 0x193   :  { %121 = vperm.xlu2 %281, %v118_v30   ;;  %127 = vperm.xlu1 %265, %v118_v30  }
 0x198   :  { %v278_v34 = vpop.permute.xlu0 %277 }
 0x199   :  { %v279_v41 = vunpack.i.l.bf16 %v278_v34  ;;  %v280_v43 = vunpack.i.h.bf16 %v278_v34 }
 0x19b   :  { %137 = vrot.lane.b32.xlu2 %v288_v13, %s384_s22  ;;  %267 = vrot.lane.b32.xlu1 %v266_v5, %s380_s1 }
 0x1a0   :  { %v284_v42 = vpop.permute.xlu0 %283 }
 0x1a1   :  { %v285_v44 = vunpack.i.l.bf16 %v284_v42  ;;  %v286_v45 = vunpack.i.h.bf16 %v284_v42 }
 0x1a3   :  { %221 = vrot.lane.b32.xlu2 %v105_v20, %s385_s23 }
 0x1ed   :  { %v122_v46 = vpop.permute.xlu2 %121 }
 0x1ee   :  { %v125_v47 = vmul.f32 %v290_v31, %v122_v46 }
 0x1f5   :  { %v138_v50 = vpop.permute.xlu2 %137 }
 0x1fd   :  { %v222_v4 = vpop.permute.xlu2 %221 }
 0x205   :  { %v128_v32 = vpop.permute.xlu1 %127 }
 0x206   :  { %v130_v33 = vmul.f32 %v290_v31, %v128_v32 }
 0x208   :  { %132 = vrot.lane.b32.xlu1 %v130_v33, %s384_s22 }
 0x20d   :  { %v268_v35 = vpop.permute.xlu1 %267 }
 0x20e   :  { %v269_v36 = vunpack.i.l.bf16 %v268_v35  ;;  %v270_v37 = vunpack.i.h.bf16 %v268_v35 }
 0x210   :  { %189 = vmatpush.msra.mxu2 %v269_v36  ;;  %175 = vrot.lane.b32.xlu1 %v289_v18, %s380_s1 }
 0x212   :  { %190 = vmatpush.msra.mxu2 %v270_v37 }
 0x214   :  { %191 = vmatpush.msra.mxu2 %v274_v39 }
 0x216   :  { %192 = vmatpush.msra.mxu2 %v275_v40 }
 0x218   :  { %193 = vmatpush.msra.mxu2 %v279_v41 }
 0x21a   :  { %194 = vmatpush.msra.mxu2 %v280_v43 }
 0x21c   :  { %195 = vmatpush.msra.mxu2 %v285_v44 }
 0x21e   :  { %196 = vmatpush.msra.mxu2 %v286_v45 }
 0x27a   :  { %v133_v48 = vpop.permute.xlu1 %132 }
 0x27b   :  { %v135_v49 = vadd.f32 %v133_v48, %v125_v47 }
 0x27d   :  { %v140_v51 = vadd.f32 %v138_v50, %v135_v49 }
 0x27f   :  { %v141_v52 = vmax.f32 %v140_v51, 0.0 }
 0x281   :  { %251 = vmatmul.msk.f32.vlgmr.msra.gmra.mxu2 %vm83_vm1, %v141_v52 }
 0x282   :  { %v176_v53 = vpop.permute.xlu1 %175 }
 0x304   :  { %v198_v54 = vpop.f32.mrf.mxu2 }
 0x305   :  { %v199_v55 = vadd.f32 %v198_v54, %v176_v53 }
 0x307   :  { %v252_v56 = vmul.f32 -1.442695, %v199_v55 }
 0x309   :  { %293 = vpow2.f32 %v252_v56 }
 0x30f   :  { %v294_v57 = vpop.eup %293 }
 0x310   :  { %v204_v58 = vadd.f32 1.0, %v294_v57 }
 0x312   :  { %295 = vrcp.f32 %v204_v58  ;;  %v216_v62 = vand.u32 2147483648, %v204_v58  ;;  %v214_v0 = vand.u32 2147483647, %v204_v58  ;;  %vm210_vm3 = vweird.f32 %v204_v58 }
 0x314   :  { %v217_v2 = vor.u32 1.1754944e-38, %v216_v62  ;;  %vm215_vm6 = vcmp.eq.f32.partialorder %v214_v0, 8.507059e+37 }
 0x318   :  { %v296_v59 = vpop.eup %295 }
 0x319   :  { %v206_v60 = vmul.f32 %v296_v59, %v204_v58  ;;  %vm211_vm2 = vweird.f32 %v296_v59 }
 0x31a   :  { %vm212_vm4 = vmor %vm210_vm3, %vm211_vm2 }
 0x31b   :  { %v207_v61 = vsub.f32 1.0, %v206_v60 }
 0x31d   :  { %v208_v63 = vmul.f32 %v296_v59, %v207_v61 }
 0x31f   :  { %v209_v1 = vadd.f32 %v296_v59, %v208_v63 }
 0x321   :  { %v213_v3 = vsel %vm212_vm4, %v296_v59, %v209_v1 }
 0x322   :  { %v218_v5 = vsel %vm215_vm6, %v217_v2, %v213_v3 }
 0x323   :  { %v225_v6 = vsel %vm224_vm5, %v218_v5, %v222_v4 }
 0x324   :  { %v227_v7 = vsel %vm226_vm7, %v225_v6, %v222_v4 }
 0x325   :  { %v229_v8 = vsel %vm228_vm8, %v227_v7, 0.0 }
 0x326   :  { %230 = vst [vmem:[#allocation7] sm:$0xff] %v229_v8 }
 0x327   :  { %241 = dma.vmem_to_hbm [thread:$0]  %s237_s25, 128, %s239_s28, [#allocation4]  }
 0x328   :  { %373 = dma.done.wait [#allocation4], 128  }
 0x329   :  { %374 = vsyncadd [#allocation4], 4294967168 }
 0x32a   :  { %246 = vsyncpa [#allocation3], 1 }
 0x32b   :  { %247 = vsyncpa [#allocation6], 1 }
 0x32c   :  { %248 = vsyncpa [#allocation4], 1 }

</bundles_post_ra>
